<compile_context>
chip_gen: v5e
topology: v5e:2x2
jax: 0.10.0
libtpu: 0.0.40
codegen_flags: <defaults>
</compile_context>

<pallas_src>
import jax
import jax.numpy as jnp
from jax.experimental import pallas as pl
from jax.experimental.pallas import tpu as pltpu

IN_FEATURES = 4
OUT_FEATURES = 3
MAX_TILE_M = 4096   # rows per grid step; sized from VMEM, not habit


def _round_up(n, m):
    return (n + m - 1) // m * m


def _linear_kernel(x_ref, w_ref, b_ref, o_ref):
    # x_ref: (tile_m, 4) f32   activations (unpadded K)
    # w_ref: (4, 3)      f32   weight, already transposed to (in, out)
    # b_ref: (1, 3)      f32   bias row
    # o_ref: (tile_m, 3) f32   narrow output block (last dim == full array dim)
    o_ref[...] = (
        jnp.dot(x_ref[...], w_ref[...], preferred_element_type=jnp.float32)
        + b_ref[...]
    )


def prepare_params(weight, bias):
    """Convert torch-layout weight (3, 4) / bias (3,) once, at model init."""
    w_t = jnp.asarray(weight, jnp.float32).T                      # (4, 3)
    b = jnp.asarray(bias, jnp.float32).reshape(1, OUT_FEATURES)   # (1, 3)
    return w_t, b


def _choose_tile_m(batch):
    # Big tiles amortize the ~0.35 us/step pipeline cost, but keep >= 2 grid
    # steps whenever the batch allows so the "parallel" batch axis can shard
    # across both TensorCores on v7x.
    half = pl.cdiv(batch, 2)
    return min(MAX_TILE_M, _round_up(max(half, 8), 8))


@jax.jit
def softmax_regression_forward(x, w_t, b):
    """y = x @ weight.T + bias, matching torch.nn.Linear(4, 3).forward."""
    batch = x.shape[0]
    x = x.astype(jnp.float32)
    tile_m = _choose_tile_m(batch)

    return pl.pallas_call(
        _linear_kernel,
        out_shape=jax.ShapeDtypeStruct((batch, OUT_FEATURES), jnp.float32),
        grid=(pl.cdiv(batch, tile_m),),
        in_specs=[
            pl.BlockSpec((tile_m, IN_FEATURES), lambda i: (i, 0)),
            pl.BlockSpec((IN_FEATURES, OUT_FEATURES), lambda i: (0, 0)),
            pl.BlockSpec((1, OUT_FEATURES), lambda i: (0, 0)),
        ],
        out_specs=pl.BlockSpec((tile_m, OUT_FEATURES), lambda i: (i, 0)),
        compiler_params=pltpu.CompilerParams(
            dimension_semantics=("parallel",)),
    )(x, w_t, b)


if __name__ == "__main__":
    key = jax.random.PRNGKey(0)
    kx, kw, kb, kx2 = jax.random.split(key, 4)

    # Deterministic parameter init mimicking torch.nn.Linear's uniform init.
    bound = 1.0 / (IN_FEATURES ** 0.5)
    weight = jax.random.uniform(kw, (OUT_FEATURES, IN_FEATURES),
                                minval=-bound, maxval=bound, dtype=jnp.float32)
    bias = jax.random.uniform(kb, (OUT_FEATURES,),
                              minval=-bound, maxval=bound, dtype=jnp.float32)

    # Padless param prep happens once here ("model init"), not per forward.
    w_t, b = prepare_params(weight, bias)

    # Small batch (single partial block, grid of 1).
    batch = 2
    x = jax.random.normal(kx, (batch, IN_FEATURES), dtype=jnp.float32)
    y = softmax_regression_forward(x, w_t, b)
    jax.block_until_ready(y)
    y_ref = x @ weight.T + bias
    assert y.shape == (batch, OUT_FEATURES)
    assert jnp.allclose(y, y_ref, atol=1e-5, rtol=1e-5)

    # Medium batch exercises the multi-step cdiv grid (2 steps -> both TCs on v7x)
    # with a partial last block and no wrapper padding.
    batch2 = 600
    x2 = jax.random.normal(kx2, (batch2, IN_FEATURES), dtype=jnp.float32)
    y2 = softmax_regression_forward(x2, w_t, b)
    jax.block_until_ready(y2)
    y2_ref = x2 @ weight.T + bias
    assert y2.shape == (batch2, OUT_FEATURES)
    assert jnp.allclose(y2, y2_ref, atol=1e-5, rtol=1e-5)

    print("KERNEL_OK")
</pallas_src>

<mosaic_0001>
module attributes {stable_mosaic.version = 11 : i64} {
  func.func @_linear_kernel(%arg0: i32, %arg1: memref<8x4xf32, #tpu.memory_space<vmem>>, %arg2: memref<4x3xf32, #tpu.memory_space<vmem>>, %arg3: memref<1x3xf32, #tpu.memory_space<vmem>>, %arg4: memref<8x3xf32, #tpu.memory_space<vmem>>) attributes {dimension_semantics = [#tpu.dimension_semantics<parallel>], iteration_bounds = array<i64: 1>, scalar_prefetch = 0 : i64, scratch_operands = 0 : i64, tpu.core_type = #tpu.core_type<tc>, window_params = [{transform_indices = @transform_0, window_bounds = array<i64: 8, 4>}, {pipeline_mode = #tpu.pipeline_mode<synchronous>, transform_indices = @transform_1, window_bounds = array<i64: 4, 3>}, {pipeline_mode = #tpu.pipeline_mode<synchronous>, transform_indices = @transform_2, window_bounds = array<i64: 1, 3>}, {transform_indices = @transform_3, window_bounds = array<i64: 8, 3>}]} {
    %c0 = arith.constant 0 : index
    %c0_0 = arith.constant 0 : index
    %0 = vector.load %arg1[%c0, %c0_0] : memref<8x4xf32, #tpu.memory_space<vmem>>, vector<8x4xf32>
    %c0_1 = arith.constant 0 : index
    %c0_2 = arith.constant 0 : index
    %1 = vector.load %arg2[%c0_1, %c0_2] : memref<4x3xf32, #tpu.memory_space<vmem>>, vector<4x3xf32>
    %cst = arith.constant dense<0.000000e+00> : vector<8x3xf32>
    %2 = tpu.matmul %0, %1, %cst {dimension_numbers = #tpu.dot_dimension_numbers<[1], [0], [0], [1], [0, 0, 1, 1], [], []>} : vector<8x4xf32>, vector<4x3xf32>, vector<8x3xf32> -> vector<8x3xf32>
    %c0_3 = arith.constant 0 : index
    %c0_4 = arith.constant 0 : index
    %3 = vector.load %arg3[%c0_3, %c0_4] : memref<1x3xf32, #tpu.memory_space<vmem>>, vector<1x3xf32>
    %4 = vector.broadcast %3 : vector<1x3xf32> to vector<8x3xf32>
    %5 = arith.addf %2, %4 : vector<8x3xf32>
    %c0_5 = arith.constant 0 : index
    %c0_6 = arith.constant 0 : index
    %6 = vector.load %arg4[%c0_5, %c0_6] : memref<8x3xf32, #tpu.memory_space<vmem>>, vector<8x3xf32>
    tpu.vector_store %arg4[%c0_5, %c0_6], %5 {strides = array<i32>} : memref<8x3xf32, #tpu.memory_space<vmem>>, vector<8x3xf32>,
    return
  }
  func.func @transform_0(%arg0: i32) -> (i32, i32) {
    %c0_i32 = arith.constant 0 : i32
    %c0_i32_0 = arith.constant 0 : i32
    return %arg0, %c0_i32 : i32, i32
  }
  func.func @transform_1(%arg0: i32) -> (i32, i32) {
    %c0_i32 = arith.constant 0 : i32
    %c0_i32_0 = arith.constant 0 : i32
    %c0_i32_1 = arith.constant 0 : i32
    return %c0_i32, %c0_i32_0 : i32, i32
  }
  func.func @transform_2(%arg0: i32) -> (i32, i32) {
    %c0_i32 = arith.constant 0 : i32
    %c0_i32_0 = arith.constant 0 : i32
    %c0_i32_1 = arith.constant 0 : i32
    return %c0_i32, %c0_i32_0 : i32, i32
  }
  func.func @transform_3(%arg0: i32) -> (i32, i32) {
    %c0_i32 = arith.constant 0 : i32
    %c0_i32_0 = arith.constant 0 : i32
    return %arg0, %c0_i32 : i32, i32
  }
}

</mosaic_0001>

<bundles_post_ra>
// kernel: softmax_regression_forward.1
= control target key start
LH: loop header
LB: loop body
LE: loop exit
PB: predicated region body
PF: predicated region fallthrough
CT: control target
= control target key end

     0   :  { %8 = vsyncpa [#allocation3], 0  ;;  %s230_s0 = inlined_call_operand.hbm [shape: f32[2,4], index: 0, kind: input, shape index: {}]   ;;  %s231_s1 = inlined_call_operand.hbm [shape: f32[4,3], index: 1, kind: input, shape index: {}]   ;;  %s232_s2 = inlined_call_operand.vmem [shape: f32[1,3], index: 2, kind: input, shape index: {}]   ;;  %s233_s3 = inlined_call_operand.hbm [shape: f32[2,3], index: 3, kind: output, shape index: {}]  }
   0x1   :  { %9 = vsyncpa [#allocation6], 0 }
   0x2   :  { %10 = vsyncpa [#allocation4], 0 }
   0x3   :  { %14 = vsyncadd [#allocation3], 96  ;;  %s15_s14 = sshll.u32 %s230_s0, 4  ;;  %s187_s15 = smov [#allocation2]   ;;  %s16_s14 = int_to_ptr.hbm [resolvable:$true] %s15_s14 }
   0x4   :  { %s17_s16 = sshll.u32 %s187_s15, 4  ;;  %s29_s19 = sshll.u32 %s231_s1, 4  ;;  %s18_s16 = int_to_ptr.vmem [resolvable:$true] %s17_s16  ;;  %s30_s19 = int_to_ptr.hbm [resolvable:$true] %s29_s19 }
   0x5   :  { %s188_s20 = smov 32   ;;  %s189_s21 = smov 2  }
   0x6   :  { %23 = dma.hbm_to_vmem [thread:$0]  %s16_s14, 32, %s18_s16, [#allocation3], %s188_s20, %s188_s20, %s189_s21  }
   0x7   :  { %s190_s22 = smov [#allocation5]  }
   0x8   :  { %s31_s23 = sshll.u32 %s190_s22, 4  ;;  %s32_s23 = int_to_ptr.vmem [resolvable:$true] %s31_s23 }
   0x9   :  { %34 = dma.hbm_to_vmem [thread:$0]  %s30_s19, 64, %s32_s23, [#allocation6]  }
   0xa   :  { %181 = dma.done.wait [#allocation3], 128  }
   0xb   :  { %182 = vsyncadd [#allocation3], 4294967168 }
   0xc   :  { %183 = dma.done.wait [#allocation6], 64  }
   0xd   :  { %184 = vsyncadd [#allocation6], 4294967232  ;;  %vm55_vm0 = vcmask 1043456   ;;  %vm51_vm1 = vcmask 31744   ;;  %v46_v0 = vld [vmem:[#allocation5] sm:$0xf] }
   0xe   :  { %v45_v1 = vld [vmem:[#allocation2] sm:$0xff]  ;;  %101 = vmatpush.msk.msra.mxu0 %vm55_vm0, %v46_v0  ;;  %vm79_vm2 = vcmask 23552  }
   0xf   :  { %102 = vmatmul.msk.f32.vlgmr.msra.gmra.mxu0 %vm51_vm1, %v45_v1  ;;  %v108_v2 = vld [vmem:[%s232_s2] ss:$0 sm:$0xff] }
  0x8c   :  { %v76_v3 = vpop.f32.mrf.mxu0 }
  0x8d   :  { %v77_v4 = vadd.f32 %v108_v2, %v76_v3 }
  0x8f   :  { %80 = vst.msk [vmem:[#allocation7] sm:$0xff] %vm79_vm2, %v77_v4 }
  0x90   :  { %84 = vsyncadd [#allocation4], 96  ;;  %s87_s26 = sshll.u32 %s233_s3, 4  ;;  %s191_s27 = smov [#allocation7]   ;;  %s88_s26 = int_to_ptr.hbm [resolvable:$true] %s87_s26 }
  0x91   :  { %s85_s28 = sshll.u32 %s191_s27, 4  ;;  %s86_s28 = int_to_ptr.vmem [resolvable:$true] %s85_s28 }
  0x92   :  { %93 = dma.vmem_to_hbm [thread:$0]  %s86_s28, 32, %s88_s26, [#allocation4], %s188_s20, %s188_s20, %s189_s21  }
  0x93   :  { %185 = dma.done.wait [#allocation4], 128  }
  0x94   :  { %186 = vsyncadd [#allocation4], 4294967168 }
  0x95   :  { %98 = vsyncpa [#allocation3], 1 }
  0x96   :  { %99 = vsyncpa [#allocation6], 1 }
  0x97   :  { %100 = vsyncpa [#allocation4], 1 }

</bundles_post_ra>
